<compile_context>
chip_gen: v7x
topology: tpu7x:2x2x1
jax: 0.10.0
libtpu: 0.0.40
codegen_flags: <defaults>
</compile_context>

<pallas_src>
import jax
import jax.numpy as jnp
import numpy as np
from jax.experimental import pallas as pl
from jax.experimental.pallas import tpu as pltpu

PAD = 128     # lane-padded feature width
IN_PAD = 32   # padded flattened-input width (21 real pixels: p = h*7 + w)


# ---------------------------------------------------------------------------
# Fused forward kernel: x (B, 32) bf16 -> logits (B, 128) bf16 (lanes 0..4 real)
# ---------------------------------------------------------------------------
def _lenet_kernel(x_ref, w_ref, b_ref, o_ref):
    # x_ref : (B, 32)    bf16  flattened input pixels, zero padded
    # w_ref : (128, 640) bf16  [conv1_low | conv2_low | fc1 | fc2 | fc3] slabs
    # b_ref : (8, 128)   f32   rows 0..4 = biases in the matching lane layouts
    # o_ref : (B, 128)   bf16  logits in lanes 0..4
    x = x_ref[...]
    b = b_ref[...]

    def dense(act, slab, rows, bias_row):
        w = w_ref[0:rows, slab * PAD:(slab + 1) * PAD]
        acc = jnp.dot(act.astype(jnp.bfloat16), w,
                      preferred_element_type=jnp.float32)
        return acc + b[bias_row:bias_row + 1, :]

    # conv1 + bias + relu.  Output lane layout: g*32 + (j*6 + c), where g is
    # the 2x2 pool-window slot, j the pooled column (0..2), c the channel.
    h1 = jnp.maximum(dense(x, 0, IN_PAD, 0), 0.0)
    # pool1: the 4 window slots are exactly 32 lanes apart -> max over the
    # cyclic orbit {0,32,64,96} (XLU rolls + VPU maxes, direction agnostic).
    m1 = jnp.maximum(jnp.maximum(h1, pltpu.roll(h1, shift=32, axis=1)),
                     jnp.maximum(pltpu.roll(h1, shift=64, axis=1),
                                 pltpu.roll(h1, shift=96, axis=1)))
    # conv2 + bias + relu.  Only rows 0..17 of the lowered weight are nonzero,
    # so the periodic pooled copies in m1's upper lanes contribute nothing.
    h2 = jnp.maximum(dense(m1, 1, PAD, 1), 0.0)
    # pool2: the two spatial positions are 16 lanes apart; lanes >= 32 of h2
    # are exactly zero and h2 >= 0, so maxing both roll directions is safe.
    m2 = jnp.maximum(h2, jnp.maximum(pltpu.roll(h2, shift=16, axis=1),
                                     pltpu.roll(h2, shift=112, axis=1)))
    # fc1 / fc2 / fc3: 128x128 padded bf16 MXU matmuls (+bias, relu on fc1/fc2).
    f1 = jnp.maximum(dense(m2, 2, PAD, 2), 0.0)
    f2 = jnp.maximum(dense(f1, 3, PAD, 3), 0.0)
    out = dense(f2, 4, PAD, 4)
    o_ref[...] = out.astype(o_ref.dtype)   # lane-dense bf16 store


# ---------------------------------------------------------------------------
# Parameter init (PyTorch-default-like)
# ---------------------------------------------------------------------------
def _uniform(key, shape, fan_in):
    bound = 1.0 / jnp.sqrt(jnp.float32(fan_in))
    return jax.random.uniform(key, shape, jnp.float32, -bound, bound)


def init_params(key):
    ks = jax.random.split(key, 10)
    return {
        "conv1_w": _uniform(ks[0], (6, 1, 2, 2), 1 * 2 * 2),
        "conv1_b": _uniform(ks[1], (6,), 1 * 2 * 2),
        "conv2_w": _uniform(ks[2], (16, 6, 1, 2), 6 * 1 * 2),
        "conv2_b": _uniform(ks[3], (16,), 6 * 1 * 2),
        "fc1_w": _uniform(ks[4], (120, 16), 16),
        "fc1_b": _uniform(ks[5], (120,), 16),
        "fc2_w": _uniform(ks[6], (84, 120), 120),
        "fc2_b": _uniform(ks[7], (84,), 120),
        "fc3_w": _uniform(ks[8], (5, 84), 84),
        "fc3_b": _uniform(ks[9], (5,), 84),
    }


# ---------------------------------------------------------------------------
# One-time packing: lower conv1/conv2 to matmuls, pad to 128 lanes, coalesce
# into a single bf16 weight slab + a single f32 bias slab.
# ---------------------------------------------------------------------------
def pack_params(params):
    c1w = np.asarray(params["conv1_w"], np.float32)
    c1b = np.asarray(params["conv1_b"], np.float32)
    c2w = np.asarray(params["conv2_w"], np.float32)
    c2b = np.asarray(params["conv2_b"], np.float32)
    f1w = np.asarray(params["fc1_w"], np.float32)
    f1b = np.asarray(params["fc1_b"], np.float32)
    f2w = np.asarray(params["fc2_w"], np.float32)
    f2b = np.asarray(params["fc2_b"], np.float32)
    f3w = np.asarray(params["fc3_w"], np.float32)
    f3b = np.asarray(params["fc3_b"], np.float32)
    assert c1w.shape == (6, 1, 2, 2) and c2w.shape == (16, 6, 1, 2)
    assert f1w.shape == (120, 16) and f2w.shape == (84, 120) and f3w.shape == (5, 84)

    # conv1 lowered to a (32, 128) matmul.  Rows: flattened input pixel
    # p = h*7 + w (21 real).  Cols: g*32 + j*6 + c, with g = 2x2 pool-window
    # slot (kh_p*2 + kw_p), j = pooled column, c = conv1 output channel.
    w1l = np.zeros((IN_PAD, PAD), np.float32)
    b1l = np.zeros((PAD,), np.float32)
    for g in range(4):
        oh, kwp = divmod(g, 2)
        for j in range(3):
            ow = 2 * j + kwp
            for c in range(6):
                col = g * 32 + j * 6 + c
                b1l[col] = c1b[c]
                for kh in range(2):
                    for kw in range(2):
                        w1l[(oh + kh) * 7 + (ow + kw), col] += c1w[c, 0, kh, kw]

    # conv2 lowered to a (128, 128) matmul.  Rows: pooled lane j*6 + cin
    # (18 real; rows >= 32 MUST stay zero so m1's periodic pooled copies
    # cannot leak).  Cols: ow*16 + co (32 real).
    w2l = np.zeros((PAD, PAD), np.float32)
    b2l = np.zeros((PAD,), np.float32)
    for ow in range(2):
        for co in range(16):
            col = ow * 16 + co
            b2l[col] = c2b[co]
            for cin in range(6):
                for kw in range(2):
                    w2l[(ow + kw) * 6 + cin, col] += c2w[co, cin, 0, kw]

    def padmat(a):
        m = np.zeros((PAD, PAD), np.float32)
        m[:a.shape[0], :a.shape[1]] = a
        return m

    def padvec(v):
        out = np.zeros((PAD,), np.float32)
        out[:v.shape[0]] = v
        return out

    w_all = np.zeros((PAD, 5 * PAD), np.float32)
    w_all[:IN_PAD, 0:PAD] = w1l
    w_all[:, 1 * PAD:2 * PAD] = w2l
    w_all[:, 2 * PAD:3 * PAD] = padmat(f1w.T)   # fc1: rows 0..15 real
    w_all[:, 3 * PAD:4 * PAD] = padmat(f2w.T)   # fc2: rows 0..119 real
    w_all[:, 4 * PAD:5 * PAD] = padmat(f3w.T)   # fc3: rows 0..83 real

    b_all = np.zeros((8, PAD), np.float32)
    b_all[0], b_all[1] = b1l, b2l
    b_all[2], b_all[3], b_all[4] = padvec(f1b), padvec(f2b), padvec(f3b)

    # Zero-row invariants: padded rows must be exactly zero so pad lanes /
    # periodic pooled copies never leak into the next matmul.
    assert not w_all[IN_PAD:, 0:PAD].any()
    assert not w_all[18:, 1 * PAD:2 * PAD].any()
    assert not w_all[16:, 2 * PAD:3 * PAD].any()
    assert not w_all[120:, 3 * PAD:4 * PAD].any()
    assert not w_all[84:, 4 * PAD:5 * PAD].any()

    return {"w_all": jnp.asarray(w_all, jnp.bfloat16),
            "b_all": jnp.asarray(b_all, jnp.float32)}


# ---------------------------------------------------------------------------
# Pure-JAX f32 reference (matches the PyTorch module) for validation
# ---------------------------------------------------------------------------
def lenet_reference(params, x):
    dn = ("NCHW", "OIHW", "NCHW")
    y = jax.lax.conv_general_dilated(x, params["conv1_w"], (1, 1), "VALID",
                                     dimension_numbers=dn)
    y = jnp.maximum(y + params["conv1_b"][None, :, None, None], 0.0)
    y = jax.lax.reduce_window(y, -jnp.inf, jax.lax.max,
                              (1, 1, 2, 2), (1, 1, 2, 2), "VALID")
    y = jax.lax.conv_general_dilated(y, params["conv2_w"], (1, 1), "VALID",
                                     dimension_numbers=dn)
    y = jnp.maximum(y + params["conv2_b"][None, :, None, None], 0.0)
    y = jax.lax.reduce_window(y, -jnp.inf, jax.lax.max,
                              (1, 1, 1, 2), (1, 1, 1, 2), "VALID")
    y = y.reshape(y.shape[0], -1)
    y = jnp.maximum(y @ params["fc1_w"].T + params["fc1_b"], 0.0)
    y = jnp.maximum(y @ params["fc2_w"].T + params["fc2_b"], 0.0)
    return y @ params["fc3_w"].T + params["fc3_b"]


# ---------------------------------------------------------------------------
# Wrapper: one fused pallas_call, batch tiled over a 1-D "parallel" grid
# ---------------------------------------------------------------------------
def _round_up(n, m):
    return ((n + m - 1) // m) * m


def lenet_forward(packed, x, *, tile_b=128):
    """x: (N, 1, 3, 7) float32 NCHW -> logits (N, 5) float32.

    tile_b: batch rows per grid step.  128 is a good default on v5e; use 256+
    on v6e/v7x for large N (and keep N/tile_b >= ~8 steps so both v7x
    TensorCores stay busy).  It is clamped for tiny demo batches.
    """
    N = x.shape[0]
    assert x.shape[1:] == (1, 3, 7), "fc1 expects 16*1*1 features -> input (1,3,7)"
    gran = 16  # bf16 sublane packing granularity
    tb = max(gran, min(_round_up(int(tile_b), gran), _round_up(N, gran)))
    Np = _round_up(N, tb)

    x2d = x.reshape(N, 21).astype(jnp.bfloat16)            # p = h*7 + w
    x2d = jnp.pad(x2d, ((0, Np - N), (0, IN_PAD - 21)))

    flops_per_row = 2 * (IN_PAD * PAD + 4 * PAD * PAD)
    bytes_accessed = (Np * IN_PAD * 2 + Np * PAD * 2
                      + int(packed["w_all"].size) * 2
                      + int(packed["b_all"].size) * 4)
    cost = pl.CostEstimate(flops=int(Np * flops_per_row), transcendentals=0,
                           bytes_accessed=int(bytes_accessed))

    out = pl.pallas_call(
        _lenet_kernel,
        out_shape=jax.ShapeDtypeStruct((Np, PAD), jnp.bfloat16),
        grid=(Np // tb,),
        in_specs=[
            pl.BlockSpec((tb, IN_PAD), lambda i: (i, 0)),     # activations
            pl.BlockSpec((PAD, 5 * PAD), lambda i: (0, 0)),   # weight slab (resident)
            pl.BlockSpec((8, PAD), lambda i: (0, 0)),         # bias slab (resident)
        ],
        out_specs=pl.BlockSpec((tb, PAD), lambda i: (i, 0)),
        compiler_params=pltpu.CompilerParams(
            dimension_semantics=("parallel",)),
        cost_estimate=cost,
    )(x2d, packed["w_all"], packed["b_all"])

    return out[:N, :5].astype(jnp.float32)


if __name__ == "__main__":
    key = jax.random.PRNGKey(0)
    pkey, xkey = jax.random.split(key)
    params = init_params(pkey)
    packed = pack_params(params)          # one-time layout prep (not per call)

    # Smallest input consistent with the module: fc1 needs 16*1*1 features,
    # which back-solves to an NCHW input of spatial size (3, 7).
    x = jax.random.normal(xkey, (2, 1, 3, 7), jnp.float32)

    logits = jax.jit(lenet_forward)(packed, x)
    jax.block_until_ready(logits)
    assert logits.shape == (2, 5) and logits.dtype == jnp.float32

    ref = lenet_reference(params, x)
    np.testing.assert_allclose(np.asarray(logits), np.asarray(ref),
                               rtol=5e-2, atol=5e-2)
    print("KERNEL_OK")
</pallas_src>

<mosaic_0001>
module attributes {stable_mosaic.version = 11 : i64} {
  func.func @_lenet_kernel(%arg0: i32, %arg1: memref<16x32xbf16, #tpu.memory_space<vmem>>, %arg2: memref<128x640xbf16, #tpu.memory_space<vmem>>, %arg3: memref<8x128xf32, #tpu.memory_space<vmem>>, %arg4: memref<16x128xbf16, #tpu.memory_space<vmem>>) attributes {dimension_semantics = [#tpu.dimension_semantics<parallel>], iteration_bounds = array<i64: 1>, scalar_prefetch = 0 : i64, scratch_operands = 0 : i64, tpu.core_type = #tpu.core_type<tc>, window_params = [{transform_indices = @transform_0, window_bounds = array<i64: 16, 32>}, {pipeline_mode = #tpu.pipeline_mode<synchronous>, transform_indices = @transform_1, window_bounds = array<i64: 128, 640>}, {pipeline_mode = #tpu.pipeline_mode<synchronous>, transform_indices = @transform_2, window_bounds = array<i64: 8, 128>}, {transform_indices = @transform_3, window_bounds = array<i64: 16, 128>}]} {
    %c0 = arith.constant 0 : index
    %c0_0 = arith.constant 0 : index
    %0 = vector.load %arg1[%c0, %c0_0] : memref<16x32xbf16, #tpu.memory_space<vmem>>, vector<16x32xbf16>
    %c0_1 = arith.constant 0 : index
    %c0_2 = arith.constant 0 : index
    %1 = vector.load %arg3[%c0_1, %c0_2] : memref<8x128xf32, #tpu.memory_space<vmem>>, vector<8x128xf32>
    %c0_3 = arith.constant 0 : index
    %c0_4 = arith.constant 0 : index
    %2 = vector.load %arg2[%c0_3, %c0_4] : memref<128x640xbf16, #tpu.memory_space<vmem>>, vector<32x128xbf16>
    %cst = arith.constant dense<0.000000e+00> : vector<16x128xf32>
    %3 = tpu.matmul %0, %2, %cst {dimension_numbers = #tpu.dot_dimension_numbers<[1], [0], [0], [1], [0, 0, 1, 1], [], []>} : vector<16x32xbf16>, vector<32x128xbf16>, vector<16x128xf32> -> vector<16x128xf32>
    %4 = vector.extract_strided_slice %1 {offsets = [0, 0], sizes = [1, 128], strides = [1, 1]} : vector<8x128xf32> to vector<1x128xf32>
    %5 = vector.broadcast %4 : vector<1x128xf32> to vector<16x128xf32>
    %6 = arith.addf %3, %5 : vector<16x128xf32>
    %cst_5 = arith.constant 0.000000e+00 : f32
    %7 = vector.broadcast %cst_5 : f32 to vector<16x128xf32>
    %8 = arith.maximumf %6, %7 : vector<16x128xf32>
    %c32_i32 = arith.constant 32 : i32
    %9 = tpu.dynamic_rotate %8 by %c32_i32 dim 1 : vector<16x128xf32>, i32 -> vector<16x128xf32>
    %10 = arith.maximumf %8, %9 : vector<16x128xf32>
    %c64_i32 = arith.constant 64 : i32
    %11 = tpu.dynamic_rotate %8 by %c64_i32 dim 1 : vector<16x128xf32>, i32 -> vector<16x128xf32>
    %c96_i32 = arith.constant 96 : i32
    %12 = tpu.dynamic_rotate %8 by %c96_i32 dim 1 : vector<16x128xf32>, i32 -> vector<16x128xf32>
    %13 = arith.maximumf %11, %12 : vector<16x128xf32>
    %14 = arith.maximumf %10, %13 : vector<16x128xf32>
    %c0_6 = arith.constant 0 : index
    %c128 = arith.constant 128 : index
    %15 = vector.load %arg2[%c0_6, %c128] : memref<128x640xbf16, #tpu.memory_space<vmem>>, vector<128x128xbf16>
    %16 = arith.truncf %14 : vector<16x128xf32> to vector<16x128xbf16>
    %cst_7 = arith.constant dense<0.000000e+00> : vector<16x128xf32>
    %17 = tpu.matmul %16, %15, %cst_7 {dimension_numbers = #tpu.dot_dimension_numbers<[1], [0], [0], [1], [0, 0, 1, 1], [], []>} : vector<16x128xbf16>, vector<128x128xbf16>, vector<16x128xf32> -> vector<16x128xf32>
    %18 = vector.extract_strided_slice %1 {offsets = [1, 0], sizes = [1, 128], strides = [1, 1]} : vector<8x128xf32> to vector<1x128xf32>
    %19 = vector.broadcast %18 : vector<1x128xf32> to vector<16x128xf32>
    %20 = arith.addf %17, %19 : vector<16x128xf32>
    %cst_8 = arith.constant 0.000000e+00 : f32
    %21 = vector.broadcast %cst_8 : f32 to vector<16x128xf32>
    %22 = arith.maximumf %20, %21 : vector<16x128xf32>
    %c16_i32 = arith.constant 16 : i32
    %23 = tpu.dynamic_rotate %22 by %c16_i32 dim 1 : vector<16x128xf32>, i32 -> vector<16x128xf32>
    %c112_i32 = arith.constant 112 : i32
    %24 = tpu.dynamic_rotate %22 by %c112_i32 dim 1 : vector<16x128xf32>, i32 -> vector<16x128xf32>
    %25 = arith.maximumf %23, %24 : vector<16x128xf32>
    %26 = arith.maximumf %22, %25 : vector<16x128xf32>
    %c0_9 = arith.constant 0 : index
    %c256 = arith.constant 256 : index
    %27 = vector.load %arg2[%c0_9, %c256] : memref<128x640xbf16, #tpu.memory_space<vmem>>, vector<128x128xbf16>
    %28 = arith.truncf %26 : vector<16x128xf32> to vector<16x128xbf16>
    %cst_10 = arith.constant dense<0.000000e+00> : vector<16x128xf32>
    %29 = tpu.matmul %28, %27, %cst_10 {dimension_numbers = #tpu.dot_dimension_numbers<[1], [0], [0], [1], [0, 0, 1, 1], [], []>} : vector<16x128xbf16>, vector<128x128xbf16>, vector<16x128xf32> -> vector<16x128xf32>
    %30 = vector.extract_strided_slice %1 {offsets = [2, 0], sizes = [1, 128], strides = [1, 1]} : vector<8x128xf32> to vector<1x128xf32>
    %31 = vector.broadcast %30 : vector<1x128xf32> to vector<16x128xf32>
    %32 = arith.addf %29, %31 : vector<16x128xf32>
    %cst_11 = arith.constant 0.000000e+00 : f32
    %33 = vector.broadcast %cst_11 : f32 to vector<16x128xf32>
    %34 = arith.maximumf %32, %33 : vector<16x128xf32>
    %c0_12 = arith.constant 0 : index
    %c384 = arith.constant 384 : index
    %35 = vector.load %arg2[%c0_12, %c384] : memref<128x640xbf16, #tpu.memory_space<vmem>>, vector<128x128xbf16>
    %36 = arith.truncf %34 : vector<16x128xf32> to vector<16x128xbf16>
    %cst_13 = arith.constant dense<0.000000e+00> : vector<16x128xf32>
    %37 = tpu.matmul %36, %35, %cst_13 {dimension_numbers = #tpu.dot_dimension_numbers<[1], [0], [0], [1], [0, 0, 1, 1], [], []>} : vector<16x128xbf16>, vector<128x128xbf16>, vector<16x128xf32> -> vector<16x128xf32>
    %38 = vector.extract_strided_slice %1 {offsets = [3, 0], sizes = [1, 128], strides = [1, 1]} : vector<8x128xf32> to vector<1x128xf32>
    %39 = vector.broadcast %38 : vector<1x128xf32> to vector<16x128xf32>
    %40 = arith.addf %37, %39 : vector<16x128xf32>
    %cst_14 = arith.constant 0.000000e+00 : f32
    %41 = vector.broadcast %cst_14 : f32 to vector<16x128xf32>
    %42 = arith.maximumf %40, %41 : vector<16x128xf32>
    %c0_15 = arith.constant 0 : index
    %c512 = arith.constant 512 : index
    %43 = vector.load %arg2[%c0_15, %c512] : memref<128x640xbf16, #tpu.memory_space<vmem>>, vector<128x128xbf16>
    %44 = arith.truncf %42 : vector<16x128xf32> to vector<16x128xbf16>
    %cst_16 = arith.constant dense<0.000000e+00> : vector<16x128xf32>
    %45 = tpu.matmul %44, %43, %cst_16 {dimension_numbers = #tpu.dot_dimension_numbers<[1], [0], [0], [1], [0, 0, 1, 1], [], []>} : vector<16x128xbf16>, vector<128x128xbf16>, vector<16x128xf32> -> vector<16x128xf32>
    %46 = vector.extract_strided_slice %1 {offsets = [4, 0], sizes = [1, 128], strides = [1, 1]} : vector<8x128xf32> to vector<1x128xf32>
    %47 = vector.broadcast %46 : vector<1x128xf32> to vector<16x128xf32>
    %48 = arith.addf %45, %47 : vector<16x128xf32>
    %49 = arith.truncf %48 : vector<16x128xf32> to vector<16x128xbf16>
    %c0_17 = arith.constant 0 : index
    %c0_18 = arith.constant 0 : index
    %50 = vector.load %arg4[%c0_17, %c0_18] : memref<16x128xbf16, #tpu.memory_space<vmem>>, vector<16x128xbf16>
    tpu.vector_store %arg4[%c0_17, %c0_18], %49 {strides = array<i32>} : memref<16x128xbf16, #tpu.memory_space<vmem>>, vector<16x128xbf16>,
    return
  }
  func.func @transform_0(%arg0: i32) -> (i32, i32) {
    %c0_i32 = arith.constant 0 : i32
    %c0_i32_0 = arith.constant 0 : i32
    return %arg0, %c0_i32 : i32, i32
  }
  func.func @transform_1(%arg0: i32) -> (i32, i32) {
    %c0_i32 = arith.constant 0 : i32
    %c0_i32_0 = arith.constant 0 : i32
    %c0_i32_1 = arith.constant 0 : i32
    return %c0_i32, %c0_i32_0 : i32, i32
  }
  func.func @transform_2(%arg0: i32) -> (i32, i32) {
    %c0_i32 = arith.constant 0 : i32
    %c0_i32_0 = arith.constant 0 : i32
    %c0_i32_1 = arith.constant 0 : i32
    return %c0_i32, %c0_i32_0 : i32, i32
  }
  func.func @transform_3(%arg0: i32) -> (i32, i32) {
    %c0_i32 = arith.constant 0 : i32
    %c0_i32_0 = arith.constant 0 : i32
    return %arg0, %c0_i32 : i32, i32
  }
}

</mosaic_0001>

<bundles_post_ra>
// kernel: lenet_forward.1
= control target key start
LH: loop header
LB: loop body
LE: loop exit
PB: predicated region body
PF: predicated region fallthrough
CT: control target
= control target key end

     0   :  { %8 = vsyncpa [#allocation3], 0  ;;  %s861_s12 = smov [#allocation2]   ;;  %s970_s0 = inlined_call_operand.vmem [shape: bf16[16,32], index: 0, kind: input, shape index: {}]   ;;  %s971_s1 = inlined_call_operand.hbm [shape: bf16[128,640], index: 1, kind: input, shape index: {}]   ;;  %s972_s2 = inlined_call_operand.vmem [shape: f32[8,128], index: 2, kind: input, shape index: {}]   ;;  %s973_s3 = inlined_call_operand.vmem [shape: bf16[16,128], index: 3, kind: output, shape index: {}]  }
   0x1   :  { %s16_s13 = sshll.u32 %s861_s12, 4  ;;  %s837_s16 = scalar_lea.hbm %s971_s1, 5120  ;;  %s17_s13 = int_to_ptr.vmem [resolvable:$true] %s16_s13 }
   0x2   :  { %p838_p0 = scmp.ne.s32.totalorder %s971_s1, %s837_s16  ;;  %p841_p1 = scmp.lt.u32.totalorder %s837_s16, %s971_s1 }
   0x4   :  { %p843_p2 = pnand %p841_p1, %p838_p0 }
   0x6   :  { %846 = shalt.err (!%p843_p2)
}
   0x7   :  { %s847_s21 = scalar_lea.vmem %s17_s13, 5120  ;;  %p852_p4 = scmp.lt.s32.totalorder %s17_s13, %s17_s13 }
   0x8   :  { %p848_p3 = scmp.ne.s32.totalorder %s17_s13, %s847_s21  ;;  %p853_p5 = scmp.lt.s32.totalorder %s847_s21, %s847_s21 }
   0xa   :  { %p854_p6 = por %p853_p5, %p852_p4 }
   0xc   :  { %p855_p7 = pnand %p854_p6, %p848_p3 }
   0xe   :  { %858 = shalt.err (!%p855_p7)
}
   0xf   :  { %s862_s22 = smov 320   ;;  %s863_s23 = smov 20  }
  0x10   :  { %22 = dma.hbm_to_vmem [thread:$0]  %s971_s1, 5120, %s17_s13, [#allocation3], %s862_s22, %s862_s22, %s863_s23  }
  0x11   :  { %859 = dma.done.wait [#allocation3], 5120  }
  0x12   :  { %860 = vsyncadd [#allocation3], 4294962176  ;;  %v864_v0 = vmov 0.0   ;;  %vm865_vm0 = vmmov 0   ;;  %v802_v1 = vld [vmem:[#allocation2] ss:$20 sps:$4 sm:$0xff]   ;;  %v36_v9 = vlaneseq }
  0x13   :  { %679 = vmatprep.subr.bf16.mxu0 %v864_v0  ;;  %683 = vmatprep.mubr.msk.bf16.mxu0 %vm865_vm0, %v864_v0  ;;  %v803_v2 = vld [vmem:[#allocation2 + $0x28] ss:$20 sps:$4 sm:$0xff]   ;;  %v804_v3 = vld [vmem:[%s970_s0] sm:$0xff]   ;;  %vm57_vm1 = vcmask 261120   ;;  %s867_s28 = smov 32   ;;  %s868_s29 = smov 64  }
  0x14   :  { %687 = vmatprep.subr.bf16.mxu1 %v864_v0  ;;  %703 = vmatprep.mubr.msk.bf16.mxu1 %vm865_vm0, %v864_v0  ;;  %v805_v4 = vld [vmem:[#allocation2 + $0x4] ss:$20 sps:$4 sm:$0xff]   ;;  %v806_v5 = vld [vmem:[#allocation2 + $0x2c] ss:$20 sps:$4 sm:$0xff]   ;;  %v807_v6 = vld [vmem:[#allocation2 + $0x54] ss:$20 sps:$4 sm:$0xff]  }
  0x15   :  { %680 = vmatpush3.bf16.msra.mxu0 %v802_v1  ;;  %688 = vmatpush3.bf16.msra.mxu1 %v805_v4  ;;  %v808_v7 = vld [vmem:[#allocation2 + $0x7c] ss:$20 sps:$4 sm:$0xff]   ;;  %v809_v8 = vld [vmem:[#allocation2 + $0xa4] ss:$20 sps:$4 sm:$0xff]   ;;  %v921_v10 = vshrl.u32 %v36_v9, 7  ;;  %s869_s30 = smov 112  }
  0x16   :  { %681 = vmatprep.subr.bf16.mxu0 %v864_v0  ;;  %689 = vmatprep.subr.bf16.mxu1 %v864_v0  ;;  %v927_v12 = vld [vmem:[%s972_s2] sm:$0xff]  ;;  %v811_v15 = vld [vmem:[#allocation2 + $0xf4] ss:$20 sps:$4 sm:$0xff]   ;;  %v812_v22 = vld [vmem:[#allocation2 + $0x11c] ss:$20 sps:$4 sm:$0xff]   ;;  %s866_s2 = smov 96  }
  0x17   :  { %v38_v11 = vsub.s32 0, %v921_v10  ;;  %v810_v13 = vld [vmem:[#allocation2 + $0xcc] ss:$20 sps:$4 sm:$0xff]   ;;  %v813_v42 = vld [vmem:[#allocation2 + $0x8] ss:$20 sps:$4 sm:$0xff]   ;;  %v141_v48 = vsub.s32 1, %v921_v10 }
  0x18   :  { %v814_v43 = vld [vmem:[#allocation2 + $0x30] ss:$20 sps:$4 sm:$0xff]   ;;  %v815_v44 = vld [vmem:[#allocation2 + $0x58] ss:$20 sps:$4 sm:$0xff]   ;;  %v816_v45 = vld [vmem:[#allocation2 + $0x80] ss:$20 sps:$4 sm:$0xff]  }
  0x19   :  { %682 = vmatpush3.bf16.msra.mxu0 %v803_v2  ;;  %690 = vmatpush3.bf16.msra.mxu1 %v806_v5  ;;  %v39_v14 = vrot.slane %v927_v12, %v38_v11  ;;  %v817_v46 = vld [vmem:[#allocation2 + $0xa8] ss:$20 sps:$4 sm:$0xff]   ;;  %v818_v47 = vld [vmem:[#allocation2 + $0xd0] ss:$20 sps:$4 sm:$0xff]   ;;  %v819_v49 = vld [vmem:[#allocation2 + $0xf8] ss:$20 sps:$4 sm:$0xff]   ;;  %v142_v50 = vrot.slane %v927_v12, %v141_v48 }
  0x1a   :  { %707 = vmatprep.subr.bf16.mxu0 %v864_v0  ;;  %691 = vmatprep.subr.bf16.mxu1 %v864_v0  ;;  %v820_v51 = vld [vmem:[#allocation2 + $0x120] ss:$20 sps:$4 sm:$0xff]   ;;  %s870_s4 = smov 16   ;;  %v823_v63 = vld [vmem:[#allocation2 + $0x5c] ss:$20 sps:$4 sm:$0xff]  }
  0x1b   :  { %v821_v58 = vld [vmem:[#allocation2 + $0xc] ss:$20 sps:$4 sm:$0xff]   ;;  %v822_v61 = vld [vmem:[#allocation2 + $0x34] ss:$20 sps:$4 sm:$0xff]   ;;  %v824_v1 = vld [vmem:[#allocation2 + $0x84] ss:$20 sps:$4 sm:$0xff]  }
  0x1c   :  { %684 = vmatmul.mubr.msk.bf16.vlgmr.msra.gmra.mrb[0].mxu0 %vm57_vm1, %v804_v3  ;;  %v825_v2 = vld [vmem:[#allocation2 + $0xac] ss:$20 sps:$4 sm:$0xff]   ;;  %v826_v3 = vld [vmem:[#allocation2 + $0xd4] ss:$20 sps:$4 sm:$0xff]  }
  0x1d   :  { %723 = vmatprep.mubr.msk.bf16.mxu0 %vm865_vm0, %v864_v0  ;;  %692 = vmatpush3.bf16.msra.mxu1 %v807_v6 }
  0x1e   :  { %693 = vmatprep.subr.bf16.mxu1 %v864_v0  ;;  %708 = vmatpush3.bf16.msra.mxu0 %v813_v42 }
  0x1f   :  { %709 = vmatprep.subr.bf16.mxu0 %v864_v0 }
  0x21   :  { %694 = vmatpush3.bf16.msra.mxu1 %v808_v7 }
  0x22   :  { %695 = vmatprep.subr.bf16.mxu1 %v864_v0  ;;  %710 = vmatpush3.bf16.msra.mxu0 %v814_v43 }
  0x23   :  { %711 = vmatprep.subr.bf16.mxu0 %v864_v0 }
  0x25   :  { %696 = vmatpush3.bf16.msra.mxu1 %v809_v8 }
  0x26   :  { %697 = vmatprep.subr.bf16.mxu1 %v864_v0  ;;  %712 = vmatpush3.bf16.msra.mxu0 %v815_v44 }
  0x27   :  { %713 = vmatprep.subr.bf16.mxu0 %v864_v0 }
  0x29   :  { %698 = vmatpush3.bf16.msra.mxu1 %v810_v13 }
  0x2a   :  { %699 = vmatprep.subr.bf16.mxu1 %v864_v0  ;;  %714 = vmatpush3.bf16.msra.mxu0 %v816_v45 }
  0x2b   :  { %715 = vmatprep.subr.bf16.mxu0 %v864_v0 }
  0x2d   :  { %700 = vmatpush3.bf16.msra.mxu1 %v811_v15 }
  0x2e   :  { %701 = vmatprep.subr.bf16.mxu1 %v864_v0  ;;  %716 = vmatpush3.bf16.msra.mxu0 %v817_v46 }
  0x2f   :  { %717 = vmatprep.subr.bf16.mxu0 %v864_v0 }
  0x31   :  { %702 = vmatpush3.bf16.msra.mxu1 %v812_v22  ;;  %v832_v22 = vld [vmem:[#allocation2 + $0x88] ss:$20 sps:$4 sm:$0xff]  }
  0x32   :  { %727 = vmatprep.subr.bf16.mxu1 %v864_v0  ;;  %718 = vmatpush3.bf16.msra.mxu0 %v818_v47 }
  0x33   :  { %719 = vmatprep.subr.bf16.mxu0 %v864_v0 }
  0x36   :  { %720 = vmatpush3.bf16.msra.mxu0 %v819_v49  ;;  %v489_v49 = vsub.s32 4, %v921_v10 }
  0x37   :  { %721 = vmatprep.subr.bf16.mxu0 %v864_v0 }
  0x3a   :  { %722 = vmatpush3.bf16.msra.mxu0 %v820_v51 }
  0x3b   :  { %747 = vmatprep.subr.bf16.mxu0 %v864_v0 }
  0xef   :  { %v95_v16 = vpop.f32.mrb[0].mxu0 }
  0xf0   :  { %v96_v17 = vadd.f32 %v95_v16, %v39_v14  ;;  %v685_v18 = vpop.f32.mrb[1].mxu0 }
  0xf1   :  { %v98_v19 = vpop.f32.mrb[2].mxu0  ;;  %v828_v18 = vld [vmem:[#allocation2 + $0x124] ss:$20 sps:$4 sm:$0xff]  }
  0xf2   :  { %v99_v20 = vadd.f32 %v98_v19, %v39_v14  ;;  %v686_v21 = vpop.f32.mrb[3].mxu0  ;;  %v102_v23 = vmax.f32 %v96_v17, 0.0  ;;  %v827_v17 = vld [vmem:[#allocation2 + $0xfc] ss:$20 sps:$4 sm:$0xff]  }
  0xf3   :  { %v829_v19 = vld [vmem:[#allocation2 + $0x10] ss:$20 sps:$4 sm:$0xff]   ;;  %v831_v21 = vld [vmem:[#allocation2 + $0x60] ss:$20 sps:$4 sm:$0xff]  }
  0xf4   :  { %v103_v24 = vmax.f32 %v99_v20, 0.0  ;;  %v830_v20 = vld [vmem:[#allocation2 + $0x38] ss:$20 sps:$4 sm:$0xff]  }
  0xf6   :  { %v787_v25 = vpack.i.bf16 %v103_v24, %v102_v23 }
  0xf8   :  { %788 = vrot.lane.b32.xlu1 %v787_v25, %s866_s2  ;;  %778 = vrot.lane.b32.xlu0 %v787_v25, %s867_s28 }
  0xfc   :  { %783 = vrot.lane.b32.xlu0 %v787_v25, %s868_s29  ;;  %v265_v25 = vsub.s32 2, %v921_v10 }
 0x16a   :  { %v779_v26 = vpop.permute.xlu0 %778  ;;  %v789_v27 = vpop.permute.xlu1 %788 }
 0x16b   :  { %v781_v28 = vunpack.i.h.bf16 %v779_v26  ;;  %v780_v29 = vunpack.i.l.bf16 %v779_v26  ;;  %v791_v31 = vunpack.i.h.bf16 %v789_v27  ;;  %v790_v32 = vunpack.i.l.bf16 %v789_v27 }
 0x16c   :  { %v266_v26 = vrot.slane %v927_v12, %v265_v25 }
 0x16d   :  { %v109_v35 = vmax.f32 %v103_v24, %v781_v28  ;;  %v108_v36 = vmax.f32 %v102_v23, %v780_v29  ;;  %v833_v23 = vld [vmem:[#allocation2 + $0xb0] ss:$20 sps:$4 sm:$0xff]   ;;  %v834_v24 = vld [vmem:[#allocation2 + $0xd8] ss:$20 sps:$4 sm:$0xff]  }
 0x16e   :  { %v784_v30 = vpop.permute.xlu0 %783 }
 0x16f   :  { %v786_v33 = vunpack.i.h.bf16 %v784_v30  ;;  %v785_v34 = vunpack.i.l.bf16 %v784_v30 }
 0x171   :  { %v119_v37 = vmax.f32 %v786_v33, %v791_v31  ;;  %v118_v38 = vmax.f32 %v785_v34, %v790_v32 }
 0x173   :  { %v120_v39 = vmax.f32 %v108_v36, %v118_v38  ;;  %v121_v40 = vmax.f32 %v109_v35, %v119_v37  ;;  %v835_v36 = vld [vmem:[#allocation2 + $0x100] ss:$20 sps:$4 sm:$0xff]   ;;  %v836_v37 = vld [vmem:[#allocation2 + $0x128] ss:$20 sps:$4 sm:$0xff]   ;;  %v377_v38 = vsub.s32 3, %v921_v10 }
 0x175   :  { %v138_v41 = vpack.c.bf16 %v121_v40, %v120_v39  ;;  %v378_v39 = vrot.slane %v927_v12, %v377_v38 }
 0x177   :  { %704 = vmatmul.mubr.bf16.vlgmr.msra.gmra.mrb[0].mxu1 %v138_v41 }
 0x178   :  { %743 = vmatprep.mubr.msk.bf16.mxu1 %vm865_vm0, %v864_v0  ;;  %728 = vmatpush3.bf16.msra.mxu1 %v821_v58 }
 0x179   :  { %729 = vmatprep.subr.bf16.mxu1 %v864_v0 }
 0x17c   :  { %730 = vmatpush3.bf16.msra.mxu1 %v822_v61 }
 0x17d   :  { %731 = vmatprep.subr.bf16.mxu1 %v864_v0 }
 0x180   :  { %732 = vmatpush3.bf16.msra.mxu1 %v823_v63 }
 0x181   :  { %733 = vmatprep.subr.bf16.mxu1 %v864_v0 }
 0x184   :  { %734 = vmatpush3.bf16.msra.mxu1 %v824_v1 }
 0x185   :  { %735 = vmatprep.subr.bf16.mxu1 %v864_v0 }
 0x188   :  { %736 = vmatpush3.bf16.msra.mxu1 %v825_v2 }
 0x189   :  { %737 = vmatprep.subr.bf16.mxu1 %v864_v0 }
 0x18c   :  { %738 = vmatpush3.bf16.msra.mxu1 %v826_v3 }
 0x18d   :  { %739 = vmatprep.subr.bf16.mxu1 %v864_v0 }
 0x190   :  { %740 = vmatpush3.bf16.msra.mxu1 %v827_v17 }
 0x191   :  { %741 = vmatprep.subr.bf16.mxu1 %v864_v0 }
 0x194   :  { %742 = vmatpush3.bf16.msra.mxu1 %v828_v18 }
 0x24a   :  { %v225_v52 = vpop.f32.mrb[0].mxu1 }
 0x24b   :  { %v226_v53 = vadd.f32 %v225_v52, %v142_v50  ;;  %v705_v54 = vpop.f32.mrb[1].mxu1 }
 0x24c   :  { %v228_v55 = vpop.f32.mrb[2].mxu1 }
 0x24d   :  { %v229_v56 = vadd.f32 %v228_v55, %v142_v50  ;;  %v706_v57 = vpop.f32.mrb[3].mxu1  ;;  %v232_v59 = vmax.f32 %v226_v53, 0.0 }
 0x24f   :  { %v233_v60 = vmax.f32 %v229_v56, 0.0 }
 0x251   :  { %v797_v62 = vpack.i.bf16 %v233_v60, %v232_v59 }
 0x253   :  { %798 = vrot.lane.b32.xlu0 %v797_v62, %s869_s30  ;;  %793 = vrot.lane.b32.xlu1 %v797_v62, %s870_s4 }
 0x2c5   :  { %v799_v4 = vpop.permute.xlu0 %798  ;;  %v794_v5 = vpop.permute.xlu1 %793 }
 0x2c6   :  { %v801_v6 = vunpack.i.h.bf16 %v799_v4  ;;  %v800_v7 = vunpack.i.l.bf16 %v799_v4  ;;  %v796_v8 = vunpack.i.h.bf16 %v794_v5  ;;  %v795_v9 = vunpack.i.l.bf16 %v794_v5 }
 0x2c8   :  { %v243_v11 = vmax.f32 %v796_v8, %v801_v6  ;;  %v242_v13 = vmax.f32 %v795_v9, %v800_v7 }
 0x2ca   :  { %v245_v14 = vmax.f32 %v233_v60, %v243_v11  ;;  %v244_v15 = vmax.f32 %v232_v59, %v242_v13 }
 0x2cc   :  { %v262_v16 = vpack.c.bf16 %v245_v14, %v244_v15 }
 0x2ce   :  { %724 = vmatmul.mubr.bf16.vlgmr.msra.gmra.mrb[4].mxu0 %v262_v16 }
 0x2cf   :  { %763 = vmatprep.mubr.msk.bf16.mxu0 %vm865_vm0, %v864_v0  ;;  %748 = vmatpush3.bf16.msra.mxu0 %v829_v19 }
 0x2d0   :  { %749 = vmatprep.subr.bf16.mxu0 %v864_v0 }
 0x2d3   :  { %750 = vmatpush3.bf16.msra.mxu0 %v830_v20 }
 0x2d4   :  { %751 = vmatprep.subr.bf16.mxu0 %v864_v0 }
 0x2d7   :  { %752 = vmatpush3.bf16.msra.mxu0 %v831_v21 }
 0x2d8   :  { %753 = vmatprep.subr.bf16.mxu0 %v864_v0 }
 0x2db   :  { %754 = vmatpush3.bf16.msra.mxu0 %v832_v22 }
 0x2dc   :  { %755 = vmatprep.subr.bf16.mxu0 %v864_v0 }
 0x2df   :  { %756 = vmatpush3.bf16.msra.mxu0 %v833_v23 }
 0x2e0   :  { %757 = vmatprep.subr.bf16.mxu0 %v864_v0 }
 0x2e3   :  { %758 = vmatpush3.bf16.msra.mxu0 %v834_v24 }
 0x2e4   :  { %759 = vmatprep.subr.bf16.mxu0 %v864_v0 }
 0x2e7   :  { %760 = vmatpush3.bf16.msra.mxu0 %v835_v36 }
 0x2e8   :  { %761 = vmatprep.subr.bf16.mxu0 %v864_v0  ;;  %v490_v0 = vrot.slane %v927_v12, %v489_v49 }
 0x2eb   :  { %762 = vmatpush3.bf16.msra.mxu0 %v836_v37 }
 0x3a1   :  { %v349_v27 = vpop.f32.mrb[4].mxu0 }
 0x3a2   :  { %v350_v28 = vadd.f32 %v349_v27, %v266_v26  ;;  %v725_v29 = vpop.f32.mrb[5].mxu0 }
 0x3a3   :  { %v352_v30 = vpop.f32.mrb[6].mxu0 }
 0x3a4   :  { %v353_v31 = vadd.f32 %v352_v30, %v266_v26  ;;  %v726_v32 = vpop.f32.mrb[7].mxu0  ;;  %v356_v33 = vmax.f32 %v350_v28, 0.0 }
 0x3a6   :  { %v357_v34 = vmax.f32 %v353_v31, 0.0 }
 0x3a8   :  { %v374_v35 = vpack.c.bf16 %v357_v34, %v356_v33 }
 0x3aa   :  { %744 = vmatmul.mubr.bf16.vlgmr.msra.gmra.mrb[4].mxu1 %v374_v35 }
 0x47d   :  { %v461_v40 = vpop.f32.mrb[4].mxu1 }
 0x47e   :  { %v462_v41 = vadd.f32 %v461_v40, %v378_v39  ;;  %v745_v42 = vpop.f32.mrb[5].mxu1 }
 0x47f   :  { %v464_v43 = vpop.f32.mrb[6].mxu1 }
 0x480   :  { %v465_v44 = vadd.f32 %v464_v43, %v378_v39  ;;  %v746_v45 = vpop.f32.mrb[7].mxu1  ;;  %v468_v46 = vmax.f32 %v462_v41, 0.0 }
 0x482   :  { %v469_v47 = vmax.f32 %v465_v44, 0.0 }
 0x484   :  { %v486_v48 = vpack.c.bf16 %v469_v47, %v468_v46 }
 0x486   :  { %764 = vmatmul.mubr.bf16.vlgmr.msra.gmra.mrb[8].mxu0 %v486_v48 }
 0x559   :  { %v573_v50 = vpop.f32.mrb[8].mxu0 }
 0x55a   :  { %v765_v51 = vpop.f32.mrb[9].mxu0  ;;  %v574_v53 = vadd.f32 %v573_v50, %v490_v0 }
 0x55b   :  { %v576_v52 = vpop.f32.mrb[10].mxu0 }
 0x55c   :  { %v577_v54 = vadd.f32 %v576_v52, %v490_v0  ;;  %v766_v55 = vpop.f32.mrb[11].mxu0 }
 0x55e   :  { %v638_v56 = vpack.c.bf16 %v577_v54, %v574_v53 }
 0x560   :  { %639 = vst [vmem:[%s973_s3] sm:$0xff] %v638_v56  }
 0x561   :  { %594 = vsyncpa [#allocation3], 1 }

</bundles_post_ra>
